<compile_context>
chip_gen: v5e
topology: v5e:2x2
jax: 0.10.0
libtpu: 0.0.40
codegen_flags: <defaults>
</compile_context>

<pallas_src>
import jax
import jax.numpy as jnp
from jax.experimental import pallas as pl
from jax.experimental.pallas import tpu as pltpu

ORIGINAL_INPUT = 77          # encoder in_features
ENCODED_SIZE = 24
CHANNELS = 1
N_CLASSES = 2

# Layer chain (in_dim, out_dim) exactly as in the PyTorch module.
LAYER_DIMS = [
    (ORIGINAL_INPUT, 32),                      # enc1
    (32, ENCODED_SIZE * CHANNELS),             # enc2
    (ENCODED_SIZE * CHANNELS, 23),             # mlp1
    (23, 15),                                  # mlp2
    (15, 10),                                  # mlp3
    (10, N_CLASSES),                           # out
]
# ReLU applied after every layer except the last one (matches the module).
RELU_AFTER = [True, True, True, True, True, False]
NUM_LAYERS = len(LAYER_DIMS)

PAD = 128          # lane-aligned padded feature width for every layer
MAX_TILE_B = 512   # batch tile (multiple of 256 for v6e/v7x MXU; fine on v5e)


def _aemlp_kernel(x_ref, ws_ref, bs_ref, o_ref):
    """Fused 6-layer MLP on one (TB, 128) activation tile.

    x_ref : (TB, 128)      activation tile
    ws_ref: (6, 128, 128)  stacked, zero-padded weights (VMEM-resident)
    bs_ref: (6, 1, 128)    stacked, zero-padded biases  (VMEM-resident)
    o_ref : (TB, 128)      output tile (lane-dense, unmasked store)
    """
    h = x_ref[...]
    for i in range(NUM_LAYERS):                      # static unroll, 6 layers
        h = jnp.dot(h, ws_ref[i], preferred_element_type=jnp.float32)
        h = h + bs_ref[i]                            # (1,128) broadcast add
        if RELU_AFTER[i]:
            h = jnp.maximum(h, 0.0)
    o_ref[...] = h


def pad_params(params):
    """One-time packing of per-layer (W, b) into stacked padded tensors."""
    ws = jnp.zeros((NUM_LAYERS, PAD, PAD), jnp.float32)
    bs = jnp.zeros((NUM_LAYERS, 1, PAD), jnp.float32)
    for i, ((din, dout), (w, b)) in enumerate(zip(LAYER_DIMS, params)):
        ws = ws.at[i, :din, :dout].set(w.astype(jnp.float32))
        bs = bs.at[i, 0, :dout].set(b.astype(jnp.float32))
    return ws, bs


@jax.jit
def aemlp_forward(x, ws, bs):
    """x: (B, 77) float32. ws: (6,128,128), bs: (6,1,128) from pad_params."""
    batch = x.shape[0]
    pad8 = ((batch + 7) // 8) * 8
    tb = min(MAX_TILE_B, pad8)                 # batch tile (multiple of 8)
    pad_batch = ((pad8 + tb - 1) // tb) * tb   # pad batch to a tile multiple

    # Only the activations are padded per call (unavoidable: input is (B,77)).
    x_p = jnp.zeros((pad_batch, PAD), jnp.float32)
    x_p = x_p.at[:batch, :ORIGINAL_INPUT].set(x.astype(jnp.float32))

    out_p = pl.pallas_call(
        _aemlp_kernel,
        out_shape=jax.ShapeDtypeStruct((pad_batch, PAD), jnp.float32),
        grid=(pad_batch // tb,),
        in_specs=[
            # Activation tile streams along the batch grid axis.
            pl.BlockSpec((tb, PAD), lambda i: (i, 0)),
            # Weights/biases: same block for every grid step -> VMEM-resident.
            pl.BlockSpec((NUM_LAYERS, PAD, PAD), lambda i: (0, 0, 0)),
            pl.BlockSpec((NUM_LAYERS, 1, PAD), lambda i: (0, 0, 0)),
        ],
        out_specs=pl.BlockSpec((tb, PAD), lambda i: (i, 0)),
        compiler_params=pltpu.CompilerParams(
            dimension_semantics=("parallel",)),   # megacore on v7x
    )(x_p, ws, bs)

    return out_p[:batch, :N_CLASSES]


def init_params(key):
    """Deterministic init mimicking PyTorch nn.Linear default U[-1/sqrt(fan_in), +]."""
    params = []
    for (din, dout) in LAYER_DIMS:
        key, kw, kb = jax.random.split(key, 3)
        bound = 1.0 / jnp.sqrt(jnp.float32(din))
        w = jax.random.uniform(kw, (din, dout), jnp.float32, -bound, bound)
        b = jax.random.uniform(kb, (dout,), jnp.float32, -bound, bound)
        params.append((w, b))
    return params


def reference_forward(x, params):
    """Pure-JAX reference of the PyTorch forward for sanity checking."""
    h = x.astype(jnp.float32)
    for i, (w, b) in enumerate(params):
        h = h @ w + b
        if RELU_AFTER[i]:
            h = jnp.maximum(h, 0.0)
    return h


if __name__ == "__main__":
    key = jax.random.PRNGKey(0)
    params = init_params(key)
    ws, bs = pad_params(params)          # pre-padded once, reused every call

    # Small single-tile case.
    key, kx1 = jax.random.split(key)
    x_small = jax.random.normal(kx1, (8, ORIGINAL_INPUT), jnp.float32)
    out_small = jax.block_until_ready(aemlp_forward(x_small, ws, bs))
    ref_small = reference_forward(x_small, params)
    assert out_small.shape == (8, N_CLASSES), out_small.shape
    assert jnp.allclose(out_small, ref_small, atol=1e-4, rtol=1e-4), (
        "small-batch mismatch: max abs err = %e"
        % float(jnp.max(jnp.abs(out_small - ref_small))))

    # Multi-tile case (exercises the batch grid + padded trailing tile).
    key, kx2 = jax.random.split(key)
    x_big = jax.random.normal(kx2, (640, ORIGINAL_INPUT), jnp.float32)
    out_big = jax.block_until_ready(aemlp_forward(x_big, ws, bs))
    ref_big = reference_forward(x_big, params)
    assert out_big.shape == (640, N_CLASSES), out_big.shape
    assert jnp.allclose(out_big, ref_big, atol=1e-4, rtol=1e-4), (
        "big-batch mismatch: max abs err = %e"
        % float(jnp.max(jnp.abs(out_big - ref_big))))

    print("KERNEL_OK")
</pallas_src>

<mosaic_0001>
module attributes {stable_mosaic.version = 11 : i64} {
  func.func @_aemlp_kernel(%arg0: i32, %arg1: memref<8x128xf32, #tpu.memory_space<vmem>>, %arg2: memref<6x128x128xf32, #tpu.memory_space<vmem>>, %arg3: memref<6x1x128xf32, #tpu.memory_space<vmem>>, %arg4: memref<8x128xf32, #tpu.memory_space<vmem>>) attributes {dimension_semantics = [#tpu.dimension_semantics<parallel>], iteration_bounds = array<i64: 1>, scalar_prefetch = 0 : i64, scratch_operands = 0 : i64, tpu.core_type = #tpu.core_type<tc>, window_params = [{transform_indices = @transform_0, window_bounds = array<i64: 8, 128>}, {pipeline_mode = #tpu.pipeline_mode<synchronous>, transform_indices = @transform_1, window_bounds = array<i64: 6, 128, 128>}, {pipeline_mode = #tpu.pipeline_mode<synchronous>, transform_indices = @transform_2, window_bounds = array<i64: 6, 1, 128>}, {transform_indices = @transform_3, window_bounds = array<i64: 8, 128>}]} {
    %c0 = arith.constant 0 : index
    %c0_0 = arith.constant 0 : index
    %0 = vector.load %arg1[%c0, %c0_0] : memref<8x128xf32, #tpu.memory_space<vmem>>, vector<8x128xf32>
    %c0_1 = arith.constant 0 : index
    %c0_2 = arith.constant 0 : index
    %c0_3 = arith.constant 0 : index
    %1 = vector.load %arg2[%c0_1, %c0_2, %c0_3] : memref<6x128x128xf32, #tpu.memory_space<vmem>>, vector<1x128x128xf32>
    %2 = vector.shape_cast %1 : vector<1x128x128xf32> to vector<128x128xf32>
    %cst = arith.constant dense<0.000000e+00> : vector<8x128xf32>
    %3 = tpu.matmul %0, %2, %cst {dimension_numbers = #tpu.dot_dimension_numbers<[1], [0], [0], [1], [0, 0, 1, 1], [], []>} : vector<8x128xf32>, vector<128x128xf32>, vector<8x128xf32> -> vector<8x128xf32>
    %c0_4 = arith.constant 0 : index
    %c0_5 = arith.constant 0 : index
    %c0_6 = arith.constant 0 : index
    %4 = vector.load %arg3[%c0_4, %c0_5, %c0_6] : memref<6x1x128xf32, #tpu.memory_space<vmem>>, vector<1x1x128xf32>
    %5 = vector.shape_cast %4 : vector<1x1x128xf32> to vector<1x128xf32>
    %6 = vector.broadcast %5 : vector<1x128xf32> to vector<8x128xf32>
    %7 = arith.addf %3, %6 : vector<8x128xf32>
    %cst_7 = arith.constant 0.000000e+00 : f32
    %8 = vector.broadcast %cst_7 : f32 to vector<8x128xf32>
    %9 = arith.maximumf %7, %8 : vector<8x128xf32>
    %c1 = arith.constant 1 : index
    %c0_8 = arith.constant 0 : index
    %c0_9 = arith.constant 0 : index
    %10 = vector.load %arg2[%c1, %c0_8, %c0_9] : memref<6x128x128xf32, #tpu.memory_space<vmem>>, vector<1x128x128xf32>
    %11 = vector.shape_cast %10 : vector<1x128x128xf32> to vector<128x128xf32>
    %cst_10 = arith.constant dense<0.000000e+00> : vector<8x128xf32>
    %12 = tpu.matmul %9, %11, %cst_10 {dimension_numbers = #tpu.dot_dimension_numbers<[1], [0], [0], [1], [0, 0, 1, 1], [], []>} : vector<8x128xf32>, vector<128x128xf32>, vector<8x128xf32> -> vector<8x128xf32>
    %c1_11 = arith.constant 1 : index
    %c0_12 = arith.constant 0 : index
    %c0_13 = arith.constant 0 : index
    %13 = vector.load %arg3[%c1_11, %c0_12, %c0_13] : memref<6x1x128xf32, #tpu.memory_space<vmem>>, vector<1x1x128xf32>
    %14 = vector.shape_cast %13 : vector<1x1x128xf32> to vector<1x128xf32>
    %15 = vector.broadcast %14 : vector<1x128xf32> to vector<8x128xf32>
    %16 = arith.addf %12, %15 : vector<8x128xf32>
    %cst_14 = arith.constant 0.000000e+00 : f32
    %17 = vector.broadcast %cst_14 : f32 to vector<8x128xf32>
    %18 = arith.maximumf %16, %17 : vector<8x128xf32>
    %c2 = arith.constant 2 : index
    %c0_15 = arith.constant 0 : index
    %c0_16 = arith.constant 0 : index
    %19 = vector.load %arg2[%c2, %c0_15, %c0_16] : memref<6x128x128xf32, #tpu.memory_space<vmem>>, vector<1x128x128xf32>
    %20 = vector.shape_cast %19 : vector<1x128x128xf32> to vector<128x128xf32>
    %cst_17 = arith.constant dense<0.000000e+00> : vector<8x128xf32>
    %21 = tpu.matmul %18, %20, %cst_17 {dimension_numbers = #tpu.dot_dimension_numbers<[1], [0], [0], [1], [0, 0, 1, 1], [], []>} : vector<8x128xf32>, vector<128x128xf32>, vector<8x128xf32> -> vector<8x128xf32>
    %c2_18 = arith.constant 2 : index
    %c0_19 = arith.constant 0 : index
    %c0_20 = arith.constant 0 : index
    %22 = vector.load %arg3[%c2_18, %c0_19, %c0_20] : memref<6x1x128xf32, #tpu.memory_space<vmem>>, vector<1x1x128xf32>
    %23 = vector.shape_cast %22 : vector<1x1x128xf32> to vector<1x128xf32>
    %24 = vector.broadcast %23 : vector<1x128xf32> to vector<8x128xf32>
    %25 = arith.addf %21, %24 : vector<8x128xf32>
    %cst_21 = arith.constant 0.000000e+00 : f32
    %26 = vector.broadcast %cst_21 : f32 to vector<8x128xf32>
    %27 = arith.maximumf %25, %26 : vector<8x128xf32>
    %c3 = arith.constant 3 : index
    %c0_22 = arith.constant 0 : index
    %c0_23 = arith.constant 0 : index
    %28 = vector.load %arg2[%c3, %c0_22, %c0_23] : memref<6x128x128xf32, #tpu.memory_space<vmem>>, vector<1x128x128xf32>
    %29 = vector.shape_cast %28 : vector<1x128x128xf32> to vector<128x128xf32>
    %cst_24 = arith.constant dense<0.000000e+00> : vector<8x128xf32>
    %30 = tpu.matmul %27, %29, %cst_24 {dimension_numbers = #tpu.dot_dimension_numbers<[1], [0], [0], [1], [0, 0, 1, 1], [], []>} : vector<8x128xf32>, vector<128x128xf32>, vector<8x128xf32> -> vector<8x128xf32>
    %c3_25 = arith.constant 3 : index
    %c0_26 = arith.constant 0 : index
    %c0_27 = arith.constant 0 : index
    %31 = vector.load %arg3[%c3_25, %c0_26, %c0_27] : memref<6x1x128xf32, #tpu.memory_space<vmem>>, vector<1x1x128xf32>
    %32 = vector.shape_cast %31 : vector<1x1x128xf32> to vector<1x128xf32>
    %33 = vector.broadcast %32 : vector<1x128xf32> to vector<8x128xf32>
    %34 = arith.addf %30, %33 : vector<8x128xf32>
    %cst_28 = arith.constant 0.000000e+00 : f32
    %35 = vector.broadcast %cst_28 : f32 to vector<8x128xf32>
    %36 = arith.maximumf %34, %35 : vector<8x128xf32>
    %c4 = arith.constant 4 : index
    %c0_29 = arith.constant 0 : index
    %c0_30 = arith.constant 0 : index
    %37 = vector.load %arg2[%c4, %c0_29, %c0_30] : memref<6x128x128xf32, #tpu.memory_space<vmem>>, vector<1x128x128xf32>
    %38 = vector.shape_cast %37 : vector<1x128x128xf32> to vector<128x128xf32>
    %cst_31 = arith.constant dense<0.000000e+00> : vector<8x128xf32>
    %39 = tpu.matmul %36, %38, %cst_31 {dimension_numbers = #tpu.dot_dimension_numbers<[1], [0], [0], [1], [0, 0, 1, 1], [], []>} : vector<8x128xf32>, vector<128x128xf32>, vector<8x128xf32> -> vector<8x128xf32>
    %c4_32 = arith.constant 4 : index
    %c0_33 = arith.constant 0 : index
    %c0_34 = arith.constant 0 : index
    %40 = vector.load %arg3[%c4_32, %c0_33, %c0_34] : memref<6x1x128xf32, #tpu.memory_space<vmem>>, vector<1x1x128xf32>
    %41 = vector.shape_cast %40 : vector<1x1x128xf32> to vector<1x128xf32>
    %42 = vector.broadcast %41 : vector<1x128xf32> to vector<8x128xf32>
    %43 = arith.addf %39, %42 : vector<8x128xf32>
    %cst_35 = arith.constant 0.000000e+00 : f32
    %44 = vector.broadcast %cst_35 : f32 to vector<8x128xf32>
    %45 = arith.maximumf %43, %44 : vector<8x128xf32>
    %c5 = arith.constant 5 : index
    %c0_36 = arith.constant 0 : index
    %c0_37 = arith.constant 0 : index
    %46 = vector.load %arg2[%c5, %c0_36, %c0_37] : memref<6x128x128xf32, #tpu.memory_space<vmem>>, vector<1x128x128xf32>
    %47 = vector.shape_cast %46 : vector<1x128x128xf32> to vector<128x128xf32>
    %cst_38 = arith.constant dense<0.000000e+00> : vector<8x128xf32>
    %48 = tpu.matmul %45, %47, %cst_38 {dimension_numbers = #tpu.dot_dimension_numbers<[1], [0], [0], [1], [0, 0, 1, 1], [], []>} : vector<8x128xf32>, vector<128x128xf32>, vector<8x128xf32> -> vector<8x128xf32>
    %c5_39 = arith.constant 5 : index
    %c0_40 = arith.constant 0 : index
    %c0_41 = arith.constant 0 : index
    %49 = vector.load %arg3[%c5_39, %c0_40, %c0_41] : memref<6x1x128xf32, #tpu.memory_space<vmem>>, vector<1x1x128xf32>
    %50 = vector.shape_cast %49 : vector<1x1x128xf32> to vector<1x128xf32>
    %51 = vector.broadcast %50 : vector<1x128xf32> to vector<8x128xf32>
    %52 = arith.addf %48, %51 : vector<8x128xf32>
    %c0_42 = arith.constant 0 : index
    %c0_43 = arith.constant 0 : index
    %53 = vector.load %arg4[%c0_42, %c0_43] : memref<8x128xf32, #tpu.memory_space<vmem>>, vector<8x128xf32>
    tpu.vector_store %arg4[%c0_42, %c0_43], %52 {strides = array<i32>} : memref<8x128xf32, #tpu.memory_space<vmem>>, vector<8x128xf32>,
    return
  }
  func.func @transform_0(%arg0: i32) -> (i32, i32) {
    %c0_i32 = arith.constant 0 : i32
    %c0_i32_0 = arith.constant 0 : i32
    return %arg0, %c0_i32 : i32, i32
  }
  func.func @transform_1(%arg0: i32) -> (i32, i32, i32) {
    %c0_i32 = arith.constant 0 : i32
    %c0_i32_0 = arith.constant 0 : i32
    %c0_i32_1 = arith.constant 0 : i32
    %c0_i32_2 = arith.constant 0 : i32
    return %c0_i32, %c0_i32_0, %c0_i32_1 : i32, i32, i32
  }
  func.func @transform_2(%arg0: i32) -> (i32, i32, i32) {
    %c0_i32 = arith.constant 0 : i32
    %c0_i32_0 = arith.constant 0 : i32
    %c0_i32_1 = arith.constant 0 : i32
    %c0_i32_2 = arith.constant 0 : i32
    return %c0_i32, %c0_i32_0, %c0_i32_1 : i32, i32, i32
  }
  func.func @transform_3(%arg0: i32) -> (i32, i32) {
    %c0_i32 = arith.constant 0 : i32
    %c0_i32_0 = arith.constant 0 : i32
    return %arg0, %c0_i32 : i32, i32
  }
}

</mosaic_0001>

<bundles_post_ra>
// kernel: aemlp_forward.1
= control target key start
LH: loop header
LB: loop body
LE: loop exit
PB: predicated region body
PF: predicated region fallthrough
CT: control target
= control target key end

     0   :  { %8 = vsyncpa [#allocation3], 0  ;;  %s332_s15 = smov [#allocation2]   ;;  %s333_s17 = smov 128   ;;  %s382_s0 = inlined_call_operand.vmem [shape: f32[8,128], index: 0, kind: input, shape index: {}]   ;;  %s383_s1 = inlined_call_operand.hbm [shape: f32[6,128,128], index: 1, kind: input, shape index: {}]   ;;  %s384_s2 = inlined_call_operand.vmem [shape: f32[6,1,128], index: 2, kind: input, shape index: {}]   ;;  %s385_s3 = inlined_call_operand.vmem [shape: f32[8,128], index: 3, kind: output, shape index: {}]  }
   0x1   :  { %s15_s14 = sshll.u32 %s383_s1, 4  ;;  %s17_s16 = sshll.u32 %s332_s15, 4  ;;  %s16_s14 = int_to_ptr.hbm [resolvable:$true] %s15_s14  ;;  %s18_s16 = int_to_ptr.vmem [resolvable:$true] %s17_s16 }
   0x2   :  { %s334_s18 = smov 8  }
   0x3   :  { %23 = dma.hbm_to_vmem [thread:$0]  %s16_s14, 12288, %s18_s16, [#allocation3], %s333_s17, %s333_s17, %s334_s18  }
   0x4   :  { %330 = dma.done.wait [#allocation3], 12288  }
   0x5   :  { %331 = vsyncadd [#allocation3], 4294955008  ;;  %v46_v0 = vld [vmem:[#allocation2 + $0x78] sm:$0xff]  ;;  %v45_v1 = vld [vmem:[#allocation2 + $0x70] sm:$0xff] }
   0x6   :  { %51 = vmatpush.msra.mxu0 %v46_v0  ;;  %v44_v2 = vld [vmem:[#allocation2 + $0x68] sm:$0xff]  ;;  %v43_v3 = vld [vmem:[#allocation2 + $0x60] sm:$0xff]  ;;  %v88_v4 = vld [vmem:[#allocation2 + $0xf8] sm:$0xff] }
   0x7   :  { %v42_v5 = vld [vmem:[#allocation2 + $0x58] sm:$0xff]  ;;  %94 = vmatpush.msra.mxu1 %v88_v4  ;;  %v87_v6 = vld [vmem:[#allocation2 + $0xf0] sm:$0xff]  ;;  %v86_v7 = vld [vmem:[#allocation2 + $0xe8] sm:$0xff] }
   0x8   :  { %52 = vmatpush.msra.mxu0 %v45_v1  ;;  %v41_v8 = vld [vmem:[#allocation2 + $0x50] sm:$0xff]  ;;  %v40_v9 = vld [vmem:[#allocation2 + $0x48] sm:$0xff]  ;;  %v85_v10 = vld [vmem:[#allocation2 + $0xe0] sm:$0xff] }
   0x9   :  { %95 = vmatpush.msra.mxu1 %v87_v6  ;;  %v84_v11 = vld [vmem:[#allocation2 + $0xd8] sm:$0xff]  ;;  %v39_v12 = vld [vmem:[#allocation2 + $0x40] sm:$0xff]  ;;  %v83_v13 = vld [vmem:[#allocation2 + $0xd0] sm:$0xff] }
   0xa   :  { %53 = vmatpush.msra.mxu0 %v44_v2  ;;  %v38_v14 = vld [vmem:[#allocation2 + $0x38] sm:$0xff]  ;;  %v82_v15 = vld [vmem:[#allocation2 + $0xc8] sm:$0xff]  ;;  %v37_v16 = vld [vmem:[#allocation2 + $0x30] sm:$0xff] }
   0xb   :  { %96 = vmatpush.msra.mxu1 %v86_v7  ;;  %v81_v17 = vld [vmem:[#allocation2 + $0xc0] sm:$0xff]  ;;  %v36_v18 = vld [vmem:[#allocation2 + $0x28] sm:$0xff]  ;;  %v80_v19 = vld [vmem:[#allocation2 + $0xb8] sm:$0xff] }
   0xc   :  { %54 = vmatpush.msra.mxu0 %v43_v3  ;;  %v35_v20 = vld [vmem:[#allocation2 + $0x20] sm:$0xff]  ;;  %v79_v21 = vld [vmem:[#allocation2 + $0xb0] sm:$0xff]  ;;  %v34_v22 = vld [vmem:[#allocation2 + $0x18] sm:$0xff] }
   0xd   :  { %97 = vmatpush.msra.mxu1 %v85_v10  ;;  %v78_v23 = vld [vmem:[#allocation2 + $0xa8] sm:$0xff]  ;;  %v33_v24 = vld [vmem:[#allocation2 + $0x10] sm:$0xff]  ;;  %v77_v25 = vld [vmem:[#allocation2 + $0xa0] sm:$0xff] }
   0xe   :  { %55 = vmatpush.msra.mxu0 %v42_v5  ;;  %v32_v26 = vld [vmem:[#allocation2 + $0x8] sm:$0xff]  ;;  %v76_v27 = vld [vmem:[#allocation2 + $0x98] sm:$0xff]  ;;  %v31_v28 = vld [vmem:[#allocation2] sm:$0xff] }
   0xf   :  { %98 = vmatpush.msra.mxu1 %v84_v11  ;;  %v30_v29 = vld [vmem:[%s382_s0] sm:$0xff]  ;;  %v75_v30 = vld [vmem:[#allocation2 + $0x90] sm:$0xff]  ;;  %v74_v31 = vld [vmem:[#allocation2 + $0x88] sm:$0xff] }
  0x10   :  { %56 = vmatpush.msra.mxu0 %v41_v8  ;;  %v73_v32 = vld [vmem:[#allocation2 + $0x80] sm:$0xff]  ;;  %v131_v33 = vld [vmem:[#allocation2 + $0x178] sm:$0xff]  ;;  %v130_v34 = vld [vmem:[#allocation2 + $0x170] sm:$0xff] }
  0x11   :  { %99 = vmatpush.msra.mxu1 %v83_v13  ;;  %137 = vmatpush.msra.mxu2 %v131_v33  ;;  %v129_v35 = vld [vmem:[#allocation2 + $0x168] sm:$0xff]  ;;  %v128_v36 = vld [vmem:[#allocation2 + $0x160] sm:$0xff]  ;;  %v127_v37 = vld [vmem:[#allocation2 + $0x158] sm:$0xff] }
  0x12   :  { %57 = vmatpush.msra.mxu0 %v40_v9  ;;  %v126_v38 = vld [vmem:[#allocation2 + $0x150] sm:$0xff]  ;;  %v125_v39 = vld [vmem:[#allocation2 + $0x148] sm:$0xff]  ;;  %v124_v40 = vld [vmem:[#allocation2 + $0x140] sm:$0xff] }
  0x13   :  { %100 = vmatpush.msra.mxu1 %v82_v15  ;;  %138 = vmatpush.msra.mxu2 %v130_v34  ;;  %v123_v41 = vld [vmem:[#allocation2 + $0x138] sm:$0xff]  ;;  %v122_v42 = vld [vmem:[#allocation2 + $0x130] sm:$0xff]  ;;  %v121_v43 = vld [vmem:[#allocation2 + $0x128] sm:$0xff] }
  0x14   :  { %58 = vmatpush.msra.mxu0 %v39_v12  ;;  %v120_v44 = vld [vmem:[#allocation2 + $0x120] sm:$0xff]  ;;  %v119_v45 = vld [vmem:[#allocation2 + $0x118] sm:$0xff]  ;;  %v118_v50 = vld [vmem:[#allocation2 + $0x110] sm:$0xff] }
  0x15   :  { %101 = vmatpush.msra.mxu1 %v81_v17  ;;  %139 = vmatpush.msra.mxu2 %v129_v35  ;;  %v300_v46 = vld [vmem:[%s384_s2] ss:$0 sm:$0xff]  ;;  %v117_v51 = vld [vmem:[#allocation2 + $0x108] sm:$0xff]  ;;  %v174_v53 = vld [vmem:[#allocation2 + $0x1f8] sm:$0xff] }
  0x16   :  { %59 = vmatpush.msra.mxu0 %v38_v14  ;;  %v116_v52 = vld [vmem:[#allocation2 + $0x100] sm:$0xff]  ;;  %v173_v54 = vld [vmem:[#allocation2 + $0x1f0] sm:$0xff]  ;;  %180 = vmatpush.msra.mxu3 %v174_v53  ;;  %v172_v55 = vld [vmem:[#allocation2 + $0x1e8] sm:$0xff] }
  0x17   :  { %102 = vmatpush.msra.mxu1 %v80_v19  ;;  %140 = vmatpush.msra.mxu2 %v128_v36  ;;  %v171_v56 = vld [vmem:[#allocation2 + $0x1e0] sm:$0xff]  ;;  %v170_v57 = vld [vmem:[#allocation2 + $0x1d8] sm:$0xff]  ;;  %v169_v58 = vld [vmem:[#allocation2 + $0x1d0] sm:$0xff] }
  0x18   :  { %60 = vmatpush.msra.mxu0 %v37_v16  ;;  %181 = vmatpush.msra.mxu3 %v173_v54  ;;  %v168_v59 = vld [vmem:[#allocation2 + $0x1c8] sm:$0xff]  ;;  %v167_v60 = vld [vmem:[#allocation2 + $0x1c0] sm:$0xff]  ;;  %v166_v61 = vld [vmem:[#allocation2 + $0x1b8] sm:$0xff] }
  0x19   :  { %103 = vmatpush.msra.mxu1 %v79_v21  ;;  %141 = vmatpush.msra.mxu2 %v127_v37  ;;  %v165_v62 = vld [vmem:[#allocation2 + $0x1b0] sm:$0xff]  ;;  %v164_v63 = vld [vmem:[#allocation2 + $0x1a8] sm:$0xff]  ;;  %v163_v0 = vld [vmem:[#allocation2 + $0x1a0] sm:$0xff] }
  0x1a   :  { %61 = vmatpush.msra.mxu0 %v36_v18  ;;  %182 = vmatpush.msra.mxu3 %v172_v55  ;;  %v162_v1 = vld [vmem:[#allocation2 + $0x198] sm:$0xff]  ;;  %v301_v2 = vld [vmem:[%s384_s2 + $0x1] ss:$0 sm:$0xff]  ;;  %v161_v6 = vld [vmem:[#allocation2 + $0x190] sm:$0xff] }
  0x1b   :  { %104 = vmatpush.msra.mxu1 %v78_v23  ;;  %142 = vmatpush.msra.mxu2 %v126_v38  ;;  %v160_v7 = vld [vmem:[#allocation2 + $0x188] sm:$0xff]  ;;  %v159_v8 = vld [vmem:[#allocation2 + $0x180] sm:$0xff]  ;;  %v217_v9 = vld [vmem:[#allocation2 + $0x278] sm:$0xff] }
  0x1c   :  { %62 = vmatpush.msra.mxu0 %v35_v20  ;;  %183 = vmatpush.msra.mxu3 %v171_v56  ;;  %v216_v10 = vld [vmem:[#allocation2 + $0x270] sm:$0xff]  ;;  %v215_v11 = vld [vmem:[#allocation2 + $0x268] sm:$0xff]  ;;  %v214_v12 = vld [vmem:[#allocation2 + $0x260] sm:$0xff] }
  0x1d   :  { %105 = vmatpush.msra.mxu1 %v77_v25  ;;  %143 = vmatpush.msra.mxu2 %v125_v39  ;;  %v213_v13 = vld [vmem:[#allocation2 + $0x258] sm:$0xff]  ;;  %v212_v14 = vld [vmem:[#allocation2 + $0x250] sm:$0xff]  ;;  %v211_v15 = vld [vmem:[#allocation2 + $0x248] sm:$0xff] }
  0x1e   :  { %63 = vmatpush.msra.mxu0 %v34_v22  ;;  %184 = vmatpush.msra.mxu3 %v170_v57  ;;  %v210_v16 = vld [vmem:[#allocation2 + $0x240] sm:$0xff]  ;;  %v209_v17 = vld [vmem:[#allocation2 + $0x238] sm:$0xff]  ;;  %v208_v18 = vld [vmem:[#allocation2 + $0x230] sm:$0xff] }
  0x1f   :  { %106 = vmatpush.msra.mxu1 %v76_v27  ;;  %144 = vmatpush.msra.mxu2 %v124_v40  ;;  %v207_v19 = vld [vmem:[#allocation2 + $0x228] sm:$0xff]  ;;  %v206_v20 = vld [vmem:[#allocation2 + $0x220] sm:$0xff]  ;;  %v205_v21 = vld [vmem:[#allocation2 + $0x218] sm:$0xff] }
  0x20   :  { %64 = vmatpush.msra.mxu0 %v33_v24  ;;  %185 = vmatpush.msra.mxu3 %v169_v58  ;;  %v302_v22 = vld [vmem:[%s384_s2 + $0x2] ss:$0 sm:$0xff]  ;;  %v203_v27 = vld [vmem:[#allocation2 + $0x208] sm:$0xff]  ;;  %v256_v33 = vld [vmem:[#allocation2 + $0x2d8] sm:$0xff] }
  0x21   :  { %107 = vmatpush.msra.mxu1 %v75_v30  ;;  %145 = vmatpush.msra.mxu2 %v123_v41  ;;  %v259_v30 = vld [vmem:[#allocation2 + $0x2f0] sm:$0xff]  ;;  %v254_v35 = vld [vmem:[#allocation2 + $0x2c8] sm:$0xff]  ;;  %v253_v36 = vld [vmem:[#allocation2 + $0x2c0] sm:$0xff] }
  0x22   :  { %65 = vmatpush.msra.mxu0 %v32_v26  ;;  %186 = vmatpush.msra.mxu3 %v168_v59  ;;  %v204_v26 = vld [vmem:[#allocation2 + $0x210] sm:$0xff]  ;;  %v252_v37 = vld [vmem:[#allocation2 + $0x2b8] sm:$0xff]  ;;  %v250_v39 = vld [vmem:[#allocation2 + $0x2a8] sm:$0xff] }
  0x23   :  { %108 = vmatpush.msra.mxu1 %v74_v31  ;;  %146 = vmatpush.msra.mxu2 %v122_v42  ;;  %v258_v31 = vld [vmem:[#allocation2 + $0x2e8] sm:$0xff]  ;;  %v255_v34 = vld [vmem:[#allocation2 + $0x2d0] sm:$0xff]  ;;  %v249_v40 = vld [vmem:[#allocation2 + $0x2a0] sm:$0xff] }
  0x24   :  { %66 = vmatpush.msra.mxu0 %v31_v28  ;;  %187 = vmatpush.msra.mxu3 %v167_v60  ;;  %v202_v28 = vld [vmem:[#allocation2 + $0x200] sm:$0xff]  ;;  %v251_v38 = vld [vmem:[#allocation2 + $0x2b0] sm:$0xff]  ;;  %v248_v41 = vld [vmem:[#allocation2 + $0x298] sm:$0xff] }
  0x25   :  { %67 = vmatmul.f32.vlgmr.msra.gmra.mxu0 %v30_v29  ;;  %109 = vmatpush.msra.mxu1 %v73_v32  ;;  %v260_v29 = vld [vmem:[#allocation2 + $0x2f8] sm:$0xff]  ;;  %v257_v32 = vld [vmem:[#allocation2 + $0x2e0] sm:$0xff] }
  0x26   :  { %147 = vmatpush.msra.mxu2 %v121_v43  ;;  %188 = vmatpush.msra.mxu3 %v166_v61  ;;  %v303_v42 = vld [vmem:[%s384_s2 + $0x3] ss:$0 sm:$0xff]  ;;  %v305_v53 = vld [vmem:[%s384_s2 + $0x5] ss:$0 sm:$0xff] }
  0x27   :  { %223 = vmatpush.msrb.mxu0 %v217_v9  ;;  %266 = vmatpush.msrb.mxu1 %v260_v29 }
  0x28   :  { %148 = vmatpush.msra.mxu2 %v120_v44  ;;  %189 = vmatpush.msra.mxu3 %v165_v62 }
  0x29   :  { %224 = vmatpush.msrb.mxu0 %v216_v10  ;;  %267 = vmatpush.msrb.mxu1 %v259_v30 }
  0x2a   :  { %149 = vmatpush.msra.mxu2 %v119_v45  ;;  %190 = vmatpush.msra.mxu3 %v164_v63 }
  0x2b   :  { %225 = vmatpush.msrb.mxu0 %v215_v11  ;;  %268 = vmatpush.msrb.mxu1 %v258_v31 }
  0x2c   :  { %150 = vmatpush.msra.mxu2 %v118_v50  ;;  %191 = vmatpush.msra.mxu3 %v163_v0 }
  0x2d   :  { %226 = vmatpush.msrb.mxu0 %v214_v12  ;;  %269 = vmatpush.msrb.mxu1 %v257_v32 }
  0x2e   :  { %151 = vmatpush.msra.mxu2 %v117_v51  ;;  %192 = vmatpush.msra.mxu3 %v162_v1 }
  0x2f   :  { %227 = vmatpush.msrb.mxu0 %v213_v13  ;;  %270 = vmatpush.msrb.mxu1 %v256_v33 }
  0x30   :  { %152 = vmatpush.msra.mxu2 %v116_v52  ;;  %193 = vmatpush.msra.mxu3 %v161_v6 }
  0x31   :  { %228 = vmatpush.msrb.mxu0 %v212_v14  ;;  %271 = vmatpush.msrb.mxu1 %v255_v34 }
  0x32   :  { %194 = vmatpush.msra.mxu3 %v160_v7 }
  0x33   :  { %229 = vmatpush.msrb.mxu0 %v211_v15  ;;  %272 = vmatpush.msrb.mxu1 %v254_v35 }
  0x34   :  { %195 = vmatpush.msra.mxu3 %v159_v8 }
  0x35   :  { %230 = vmatpush.msrb.mxu0 %v210_v16  ;;  %273 = vmatpush.msrb.mxu1 %v253_v36 }
  0x37   :  { %231 = vmatpush.msrb.mxu0 %v209_v17  ;;  %274 = vmatpush.msrb.mxu1 %v252_v37 }
  0x39   :  { %232 = vmatpush.msrb.mxu0 %v208_v18  ;;  %275 = vmatpush.msrb.mxu1 %v251_v38 }
  0x3b   :  { %233 = vmatpush.msrb.mxu0 %v207_v19  ;;  %276 = vmatpush.msrb.mxu1 %v250_v39 }
  0x3d   :  { %234 = vmatpush.msrb.mxu0 %v206_v20  ;;  %277 = vmatpush.msrb.mxu1 %v249_v40 }
  0x3f   :  { %235 = vmatpush.msrb.mxu0 %v205_v21  ;;  %278 = vmatpush.msrb.mxu1 %v248_v41 }
  0x41   :  { %236 = vmatpush.msrb.mxu0 %v204_v26 }
  0x43   :  { %237 = vmatpush.msrb.mxu0 %v203_v27 }
  0x45   :  { %238 = vmatpush.msrb.mxu0 %v202_v28 }
  0xa2   :  { %v68_v47 = vpop.f32.mrf.mxu0 }
  0xa3   :  { %v69_v48 = vadd.f32 %v300_v46, %v68_v47  ;;  %v247_v46 = vld [vmem:[#allocation2 + $0x290] sm:$0xff]  ;;  %v246_v47 = vld [vmem:[#allocation2 + $0x288] sm:$0xff] }
  0xa4   :  { %279 = vmatpush.msrb.mxu1 %v247_v46 }
  0xa5   :  { %v71_v49 = vmax.f32 %v69_v48, 0.0  ;;  %v245_v48 = vld [vmem:[#allocation2 + $0x280] sm:$0xff] }
  0xa6   :  { %280 = vmatpush.msrb.mxu1 %v246_v47 }
  0xa7   :  { %110 = vmatmul.f32.vlgmr.msra.gmra.mxu1 %v71_v49  ;;  %v304_v49 = vld [vmem:[%s384_s2 + $0x4] ss:$0 sm:$0xff] }
  0xa8   :  { %281 = vmatpush.msrb.mxu1 %v245_v48 }
 0x124   :  { %v111_v3 = vpop.f32.mrf.mxu1 }
 0x125   :  { %v112_v4 = vadd.f32 %v301_v2, %v111_v3 }
 0x127   :  { %v114_v5 = vmax.f32 %v112_v4, 0.0 }
 0x129   :  { %153 = vmatmul.f32.vlgmr.msra.gmra.mxu2 %v114_v5 }
 0x1ac   :  { %v154_v23 = vpop.f32.mrf.mxu2 }
 0x1ad   :  { %v155_v24 = vadd.f32 %v302_v22, %v154_v23 }
 0x1af   :  { %v157_v25 = vmax.f32 %v155_v24, 0.0 }
 0x1b1   :  { %196 = vmatmul.f32.vlgmr.msra.gmra.mxu3 %v157_v25 }
 0x234   :  { %v197_v43 = vpop.f32.mrf.mxu3 }
 0x235   :  { %v198_v44 = vadd.f32 %v303_v42, %v197_v43 }
 0x237   :  { %v200_v45 = vmax.f32 %v198_v44, 0.0 }
 0x239   :  { %239 = vmatmul.f32.vlgmr.msrb.gmra.mxu0 %v200_v45 }
 0x2b6   :  { %v240_v50 = vpop.f32.mrf.mxu0 }
 0x2b7   :  { %v241_v51 = vadd.f32 %v304_v49, %v240_v50 }
 0x2b9   :  { %v243_v52 = vmax.f32 %v241_v51, 0.0 }
 0x2bb   :  { %282 = vmatmul.f32.vlgmr.msrb.gmra.mxu1 %v243_v52 }
 0x338   :  { %v283_v54 = vpop.f32.mrf.mxu1 }
 0x339   :  { %v284_v55 = vadd.f32 %v305_v53, %v283_v54 }
 0x33b   :  { %286 = vst [vmem:[%s385_s3] sm:$0xff] %v284_v55 }
 0x33c   :  { %291 = vsyncpa [#allocation3], 1 }

</bundles_post_ra>
